<compile_context>
chip_gen: v6e
topology: v6e:2x2x1
jax: 0.10.0
libtpu: 0.0.40
codegen_flags: <defaults>
</compile_context>

<pallas_src>
import jax
import jax.numpy as jnp
from jax.experimental import pallas as pl
from jax.experimental.pallas import tpu as pltpu


# -----------------------------------------------------------------------------
# Kernel: full 3-layer MLP on one batch tile, feature-major (batch on lanes).
# -----------------------------------------------------------------------------
def _ffnnc_kernel(x_ref, w1_ref, b1_ref, w2_ref, b2_ref, w3_ref, b3_ref, o_ref):
    xt = x_ref[...]                                                 # (D_in, TB)
    h1 = jnp.tanh(
        jnp.dot(w1_ref[...], xt, preferred_element_type=jnp.float32)
        + b1_ref[...]
    )                                                               # (H, TB)
    h2 = jnp.tanh(
        jnp.dot(w2_ref[...], h1, preferred_element_type=jnp.float32)
        + b2_ref[...]
    )                                                               # (H, TB)
    o_ref[...] = (
        jnp.dot(w3_ref[...], h2, preferred_element_type=jnp.float32)
        + b3_ref[...]
    ).astype(o_ref.dtype)                                           # (D_out, TB)


def _choose_batch_tile(B):
    """Largest lane-aligned batch tile <= B (multiple of 128), else B itself."""
    for tb in (8192, 4096, 2048, 1024, 512, 256, 128):
        if B >= tb:
            return tb
    return B  # B < 128: single full-extent block


def ffnnc_forward(x, params):
    """x: [B, D_in] float32.
    params: PyTorch-layout weights w* of shape (out, in), biases b* of shape (out, 1)."""
    w1, b1 = params["w1"], params["b1"]
    w2, b2 = params["w2"], params["b2"]
    w3, b3 = params["w3"], params["b3"]

    B, D_in = x.shape
    H = w1.shape[0]
    D_out = w3.shape[0]

    TB = _choose_batch_tile(B)
    num_blocks = pl.cdiv(B, TB)
    Bp = num_blocks * TB

    # Feature-major: batch -> lanes. Pad batch (with zeros) up to a whole
    # number of tiles; padded columns are computed and then sliced away.
    xt = x.T                                                        # (D_in, B)
    if Bp != B:
        xt = jnp.pad(xt, ((0, 0), (0, Bp - B)))

    def resident(a):
        # Full-array block, constant index map -> stays resident in VMEM.
        return pl.BlockSpec(a.shape, lambda i: (0, 0))

    cost = pl.CostEstimate(
        flops=2 * Bp * (D_in * H + H * H + H * D_out),
        transcendentals=2 * Bp * H,
        bytes_accessed=4 * (
            Bp * (D_in + D_out)
            + D_in * H + H * H + H * D_out + 2 * H + D_out
        ),
    )

    out_t = pl.pallas_call(
        _ffnnc_kernel,
        out_shape=jax.ShapeDtypeStruct((D_out, Bp), jnp.float32),
        grid=(num_blocks,),
        in_specs=[
            pl.BlockSpec((D_in, TB), lambda i: (0, i)),             # x.T tile
            resident(w1), resident(b1),
            resident(w2), resident(b2),
            resident(w3), resident(b3),
        ],
        out_specs=pl.BlockSpec((D_out, TB), lambda i: (0, i)),
        compiler_params=pltpu.CompilerParams(
            dimension_semantics=("parallel",),                      # 2x on v7x
        ),
        cost_estimate=cost,
    )(xt, w1, b1, w2, b2, w3, b3)

    return out_t[:, :B].T                                           # (B, D_out)


def init_params(key, D_in=6, H=20, D_out=8):
    """PyTorch Linear default init U(-1/sqrt(fan_in), 1/sqrt(fan_in)).
    Weights kept in native (out, in) layout; biases as (out, 1) columns."""
    ks = jax.random.split(key, 6)

    def lin(kw, kb, fan_in, fan_out):
        bound = 1.0 / jnp.sqrt(float(fan_in))
        w = jax.random.uniform(kw, (fan_out, fan_in), jnp.float32, -bound, bound)
        b = jax.random.uniform(kb, (fan_out, 1), jnp.float32, -bound, bound)
        return w, b

    w1, b1 = lin(ks[0], ks[1], D_in, H)
    w2, b2 = lin(ks[2], ks[3], H, H)
    w3, b3 = lin(ks[4], ks[5], H, D_out)
    return {"w1": w1, "b1": b1, "w2": w2, "b2": b2, "w3": w3, "b3": b3}


def ffnnc_reference(x, params):
    """Pure-JAX reference of the PyTorch forward (batch-major)."""
    h = jnp.tanh(x @ params["w1"].T + params["b1"][:, 0])
    h = jnp.tanh(h @ params["w2"].T + params["b2"][:, 0])
    return h @ params["w3"].T + params["b3"][:, 0]


if __name__ == "__main__":
    key = jax.random.PRNGKey(0)
    k_x, k_x2, k_p = jax.random.split(key, 3)

    D_in, H, D_out = 6, 20, 8
    params = init_params(k_p, D_in=D_in, H=H, D_out=D_out)

    # Small demo batch (single full-extent block).
    B = 8
    x = jax.random.normal(k_x, (B, D_in), dtype=jnp.float32)
    out = jax.block_until_ready(ffnnc_forward(x, params))
    ref = ffnnc_reference(x, params)
    assert out.shape == (B, D_out)
    assert jnp.allclose(out, ref, atol=1e-4, rtol=1e-5), "mismatch vs reference (B=8)"

    # Larger batch exercising the multi-block grid + padding path (TB=128, 3 tiles).
    B2 = 300
    x2 = jax.random.normal(k_x2, (B2, D_in), dtype=jnp.float32)
    out2 = jax.block_until_ready(ffnnc_forward(x2, params))
    ref2 = ffnnc_reference(x2, params)
    assert out2.shape == (B2, D_out)
    assert jnp.allclose(out2, ref2, atol=1e-4, rtol=1e-5), "mismatch vs reference (B=300)"

    print("KERNEL_OK")
</pallas_src>

<mosaic_0001>
module attributes {stable_mosaic.version = 11 : i64} {
  func.func @_ffnnc_kernel(%arg0: i32, %arg1: memref<6x8xf32, #tpu.memory_space<vmem>>, %arg2: memref<20x6xf32, #tpu.memory_space<vmem>>, %arg3: memref<20x1xf32, #tpu.memory_space<vmem>>, %arg4: memref<20x20xf32, #tpu.memory_space<vmem>>, %arg5: memref<20x1xf32, #tpu.memory_space<vmem>>, %arg6: memref<8x20xf32, #tpu.memory_space<vmem>>, %arg7: memref<8x1xf32, #tpu.memory_space<vmem>>, %arg8: memref<8x8xf32, #tpu.memory_space<vmem>>) attributes {dimension_semantics = [#tpu.dimension_semantics<parallel>], iteration_bounds = array<i64: 1>, scalar_prefetch = 0 : i64, scratch_operands = 0 : i64, tpu.core_type = #tpu.core_type<tc>, window_params = [{transform_indices = @transform_0, window_bounds = array<i64: 6, 8>}, {pipeline_mode = #tpu.pipeline_mode<synchronous>, transform_indices = @transform_1, window_bounds = array<i64: 20, 6>}, {pipeline_mode = #tpu.pipeline_mode<synchronous>, transform_indices = @transform_2, window_bounds = array<i64: 20, 1>}, {pipeline_mode = #tpu.pipeline_mode<synchronous>, transform_indices = @transform_3, window_bounds = array<i64: 20, 20>}, {pipeline_mode = #tpu.pipeline_mode<synchronous>, transform_indices = @transform_4, window_bounds = array<i64: 20, 1>}, {pipeline_mode = #tpu.pipeline_mode<synchronous>, transform_indices = @transform_5, window_bounds = array<i64: 8, 20>}, {pipeline_mode = #tpu.pipeline_mode<synchronous>, transform_indices = @transform_6, window_bounds = array<i64: 8, 1>}, {transform_indices = @transform_7, window_bounds = array<i64: 8, 8>}]} {
    %c0 = arith.constant 0 : index
    %c0_0 = arith.constant 0 : index
    %0 = vector.load %arg1[%c0, %c0_0] : memref<6x8xf32, #tpu.memory_space<vmem>>, vector<6x8xf32>
    %c0_1 = arith.constant 0 : index
    %c0_2 = arith.constant 0 : index
    %1 = vector.load %arg2[%c0_1, %c0_2] : memref<20x6xf32, #tpu.memory_space<vmem>>, vector<20x6xf32>
    %cst = arith.constant dense<0.000000e+00> : vector<20x8xf32>
    %2 = tpu.matmul %1, %0, %cst {dimension_numbers = #tpu.dot_dimension_numbers<[1], [0], [0], [1], [0, 0, 1, 1], [], []>} : vector<20x6xf32>, vector<6x8xf32>, vector<20x8xf32> -> vector<20x8xf32>
    %c0_3 = arith.constant 0 : index
    %c0_4 = arith.constant 0 : index
    %3 = vector.load %arg3[%c0_3, %c0_4] : memref<20x1xf32, #tpu.memory_space<vmem>>, vector<20x1xf32>
    %4 = vector.broadcast %3 : vector<20x1xf32> to vector<20x8xf32>
    %5 = arith.addf %2, %4 : vector<20x8xf32>
    %6 = math.tanh %5 : vector<20x8xf32>
    %c0_5 = arith.constant 0 : index
    %c0_6 = arith.constant 0 : index
    %7 = vector.load %arg4[%c0_5, %c0_6] : memref<20x20xf32, #tpu.memory_space<vmem>>, vector<20x20xf32>
    %cst_7 = arith.constant dense<0.000000e+00> : vector<20x8xf32>
    %8 = tpu.matmul %7, %6, %cst_7 {dimension_numbers = #tpu.dot_dimension_numbers<[1], [0], [0], [1], [0, 0, 1, 1], [], []>} : vector<20x20xf32>, vector<20x8xf32>, vector<20x8xf32> -> vector<20x8xf32>
    %c0_8 = arith.constant 0 : index
    %c0_9 = arith.constant 0 : index
    %9 = vector.load %arg5[%c0_8, %c0_9] : memref<20x1xf32, #tpu.memory_space<vmem>>, vector<20x1xf32>
    %10 = vector.broadcast %9 : vector<20x1xf32> to vector<20x8xf32>
    %11 = arith.addf %8, %10 : vector<20x8xf32>
    %12 = math.tanh %11 : vector<20x8xf32>
    %c0_10 = arith.constant 0 : index
    %c0_11 = arith.constant 0 : index
    %13 = vector.load %arg6[%c0_10, %c0_11] : memref<8x20xf32, #tpu.memory_space<vmem>>, vector<8x20xf32>
    %cst_12 = arith.constant dense<0.000000e+00> : vector<8x8xf32>
    %14 = tpu.matmul %13, %12, %cst_12 {dimension_numbers = #tpu.dot_dimension_numbers<[1], [0], [0], [1], [0, 0, 1, 1], [], []>} : vector<8x20xf32>, vector<20x8xf32>, vector<8x8xf32> -> vector<8x8xf32>
    %c0_13 = arith.constant 0 : index
    %c0_14 = arith.constant 0 : index
    %15 = vector.load %arg7[%c0_13, %c0_14] : memref<8x1xf32, #tpu.memory_space<vmem>>, vector<8x1xf32>
    %16 = vector.broadcast %15 : vector<8x1xf32> to vector<8x8xf32>
    %17 = arith.addf %14, %16 : vector<8x8xf32>
    %c0_15 = arith.constant 0 : index
    %c0_16 = arith.constant 0 : index
    %18 = vector.load %arg8[%c0_15, %c0_16] : memref<8x8xf32, #tpu.memory_space<vmem>>, vector<8x8xf32>
    tpu.vector_store %arg8[%c0_15, %c0_16], %17 {strides = array<i32>} : memref<8x8xf32, #tpu.memory_space<vmem>>, vector<8x8xf32>,
    return
  }
  func.func @transform_0(%arg0: i32) -> (i32, i32) {
    %c0_i32 = arith.constant 0 : i32
    %c0_i32_0 = arith.constant 0 : i32
    return %c0_i32, %arg0 : i32, i32
  }
  func.func @transform_1(%arg0: i32) -> (i32, i32) {
    %c0_i32 = arith.constant 0 : i32
    %c0_i32_0 = arith.constant 0 : i32
    %c0_i32_1 = arith.constant 0 : i32
    return %c0_i32, %c0_i32_0 : i32, i32
  }
  func.func @transform_2(%arg0: i32) -> (i32, i32) {
    %c0_i32 = arith.constant 0 : i32
    %c0_i32_0 = arith.constant 0 : i32
    %c0_i32_1 = arith.constant 0 : i32
    return %c0_i32, %c0_i32_0 : i32, i32
  }
  func.func @transform_3(%arg0: i32) -> (i32, i32) {
    %c0_i32 = arith.constant 0 : i32
    %c0_i32_0 = arith.constant 0 : i32
    %c0_i32_1 = arith.constant 0 : i32
    return %c0_i32, %c0_i32_0 : i32, i32
  }
  func.func @transform_4(%arg0: i32) -> (i32, i32) {
    %c0_i32 = arith.constant 0 : i32
    %c0_i32_0 = arith.constant 0 : i32
    %c0_i32_1 = arith.constant 0 : i32
    return %c0_i32, %c0_i32_0 : i32, i32
  }
  func.func @transform_5(%arg0: i32) -> (i32, i32) {
    %c0_i32 = arith.constant 0 : i32
    %c0_i32_0 = arith.constant 0 : i32
    %c0_i32_1 = arith.constant 0 : i32
    return %c0_i32, %c0_i32_0 : i32, i32
  }
  func.func @transform_6(%arg0: i32) -> (i32, i32) {
    %c0_i32 = arith.constant 0 : i32
    %c0_i32_0 = arith.constant 0 : i32
    %c0_i32_1 = arith.constant 0 : i32
    return %c0_i32, %c0_i32_0 : i32, i32
  }
  func.func @transform_7(%arg0: i32) -> (i32, i32) {
    %c0_i32 = arith.constant 0 : i32
    %c0_i32_0 = arith.constant 0 : i32
    return %c0_i32, %arg0 : i32, i32
  }
}

</mosaic_0001>

<bundles_post_ra>
// kernel: tpu_custom_call.1
= control target key start
LH: loop header
LB: loop body
LE: loop exit
PB: predicated region body
PF: predicated region fallthrough
CT: control target
= control target key end

     0   :  { %vm59_vm0 = vcmask 1045504   ;;  %v462_v2 = vmov 0.0   ;;  %vm463_vm1 = vmmov 0   ;;  %vm49_vm2 = vcmask 48128   ;;  %s584_s0 = inlined_call_operand.vmem [shape: f32[6,8], index: 0, kind: input, shape index: {}]   ;;  %s585_s1 = inlined_call_operand.vmem [shape: f32[20,6], index: 1, kind: input, shape index: {}]   ;;  %s586_s2 = inlined_call_operand.vmem [shape: f32[20,1], index: 2, kind: input, shape index: {}]   ;;  %s587_s3 = inlined_call_operand.vmem [shape: f32[20,20], index: 3, kind: input, shape index: {}]   ;;  %s588_s4 = inlined_call_operand.vmem [shape: f32[20,1], index: 4, kind: input, shape index: {}]   ;;  %s589_s5 = inlined_call_operand.vmem [shape: f32[8,20], index: 5, kind: input, shape index: {}]   ;;  %s590_s6 = inlined_call_operand.vmem [shape: f32[8,1], index: 6, kind: input, shape index: {}]   ;;  %s591_s7 = inlined_call_operand.hbm [shape: f32[8,8], index: 7, kind: output, shape index: {}]  }
   0x1   :  { %v27_v0 = vld [vmem:[%s584_s0] sm:$0x3f]  ;;  %387 = vmatprep.subr.mxu0 %v462_v2  ;;  %389 = vmatprep.mubr.msk.f32.mxu0 %vm463_vm1, %v462_v2  ;;  %v464_v3 = vmov 0   ;;  %v33_v4 = vld [vmem:[%s586_s2 + $0x10] sm:$0xf]  ;;  %v29_v6 = vld [vmem:[%s585_s1 + $0x8] sm:$0xff] }
   0x2   :  { %v28_v1 = vld [vmem:[%s585_s1] sm:$0xff]  ;;  %388 = vmatpush3.msk.msra.mxu0 %vm59_vm0, %v27_v0  ;;  %426 = vset.pattern.permute.xlu0 %v464_v3  ;;  %v32_v7 = vld [vmem:[%s586_s2 + $0x8] sm:$0xff] }
   0x3   :  { %v31_v5 = vld [vmem:[%s586_s2] sm:$0xff]  ;;  %390 = vmatmul.mubr.msk.f32.vlgmr.msra.gmra.mxu0 %vm49_vm2, %v28_v1  ;;  %46 = vperm.xlu0 %426, %v33_v4  }
   0x4   :  { %392 = vmatprep.mubr.msk.f32.mxu0 %vm463_vm1, %v462_v2  ;;  %427 = vset.pattern.permute.xlu1 %v464_v3 }
   0x5   :  { %12 = vsyncpa [#allocation3], 0  ;;  %36 = vperm.xlu1 %427, %v31_v5   ;;  %398 = vmatprep.subr.mxu1 %v462_v2  ;;  %v151_v8 = vld [vmem:[%s588_s4 + $0x10] sm:$0xf]  ;;  %v150_v10 = vld [vmem:[%s588_s4 + $0x8] sm:$0xff]  ;;  %vm177_vm3 = vcmask 1043456  }
   0x6   :  { %404 = vmatprep.mubr.msk.f32.mxu1 %vm463_vm1, %v462_v2  ;;  %413 = vmatprep.subr.mxu0 %v462_v2  ;;  %v30_v9 = vld [vmem:[%s585_s1 + $0x10] sm:$0xf]  ;;  %v149_v11 = vld [vmem:[%s588_s4] sm:$0xff]  ;;  %vm167_vm4 = vcmask 162816   ;;  %v147_v29 = vld [vmem:[%s587_s3 + $0x8] sm:$0xff]  ;;  %s465_s25 = smov [#allocation2]  }
   0x7   :  { %393 = vmatmul.mubr.msk.f32.gmra.mxu0 %vm49_vm2, %v29_v6  ;;  %41 = vperm.xlu0 %426, %v32_v7   ;;  %v265_v12 = vld [vmem:[%s590_s6] sm:$0xff]  ;;  %v148_v30 = vld [vmem:[%s587_s3 + $0x10] sm:$0xf]  ;;  %s355_s26 = sshll.u32 %s465_s25, 4  ;;  %vm347_vm5 = vcmask 64512   ;;  %s356_s26 = int_to_ptr.vmem [resolvable:$true] %s355_s26 }
   0x8   :  { %395 = vmatprep.mubr.msk.f32.mxu0 %vm463_vm1, %v462_v2  ;;  %v146_v27 = vld [vmem:[%s587_s3] sm:$0xff]  ;;  %s440_s27 = scalar_lea.vmem %s356_s26, 128  ;;  %p445_p1 = scmp.lt.s32.totalorder %s356_s26, %s356_s26 }
   0x9   :  { %164 = vperm.xlu1 %427, %v151_v8   ;;  %v264_v45 = vld [vmem:[%s589_s5] sm:$0xff]  ;;  %p441_p0 = scmp.ne.s32.totalorder %s356_s26, %s440_s27  ;;  %p446_p2 = scmp.lt.s32.totalorder %s440_s27, %s440_s27 }
   0xb   :  { %396 = vmatmul.mubr.msk.f32.gmra.mxu0 %vm49_vm2, %v30_v9  ;;  %159 = vperm.xlu0 %426, %v150_v10   ;;  %p447_p3 = por %p446_p2, %p445_p1 }
   0xc   :  { %419 = vmatprep.mubr.msk.f32.mxu0 %vm463_vm1, %v462_v2 }
   0xd   :  { %154 = vperm.xlu1 %427, %v149_v11   ;;  %p448_p4 = pnand %p447_p3, %p441_p0 }
   0xf   :  { %268 = vperm.xlu0 %426, %v265_v12  }
  0x7e   :  { %v47_v14 = vpop.permute.xlu0 %46 }
  0x80   :  { %v37_v18 = vpop.permute.xlu1 %36 }
  0x82   :  { %v42_v19 = vpop.permute.xlu0 %41 }
  0x84   :  { %v165_v33 = vpop.permute.xlu1 %164 }
  0x86   :  { %v160_v36 = vpop.permute.xlu0 %159 }
  0x88   :  { %v155_v40 = vpop.permute.xlu1 %154 }
  0x8a   :  { %v269_v47 = vpop.permute.xlu0 %268 }
  0xc3   :  { %v129_v13 = vpop.f32.mrf.mxu0 }
  0xc4   :  { %v130_v24 = vadd.f32 %v129_v13, %v37_v18 }
  0xc5   :  { %v391_v15 = vpop.f32.mrf.mxu0 }
  0xc7   :  { %v134_v16 = vpop.f32.mrf.mxu0 }
  0xc8   :  { %v135_v21 = vadd.f32 %v134_v16, %v42_v19 }
  0xc9   :  { %v394_v17 = vpop.f32.mrf.mxu0 }
  0xcb   :  { %v139_v20 = vpop.f32.mrf.mxu0 }
  0xcc   :  { %v140_v22 = vadd.f32 %v139_v20, %v47_v14 }
  0xcd   :  { %v397_v23 = vpop.f32.mrf.mxu0 }
  0xce   :  { %428 = vtanh.f32 %v140_v22 }
  0xcf   :  { %430 = vtanh.f32 %v135_v21 }
  0xd0   :  { %432 = vtanh.f32 %v130_v24 }
  0xdb   :  { %v429_v25 = vpop.eup %428 }
  0xdc   :  { %399 = vmatpush3.msk.msra.mxu1 %vm177_vm3, %v429_v25  ;;  %v431_v26 = vpop.eup %430 }
  0xdd   :  { %400 = vmatprep.subr.mxu1 %v462_v2  ;;  %v433_v28 = vpop.eup %432 }
  0xde   :  { %401 = vmatpush3.msra.mxu1 %v431_v26 }
  0xdf   :  { %402 = vmatprep.subr.mxu1 %v462_v2 }
  0xe0   :  { %403 = vmatpush3.msra.mxu1 %v433_v28 }
  0xe1   :  { %405 = vmatmul.mubr.msk.f32.vlgmr.msra.gmra.mxu1 %vm167_vm4, %v146_v27 }
  0xe2   :  { %407 = vmatprep.mubr.msk.f32.mxu1 %vm463_vm1, %v462_v2 }
  0xe5   :  { %408 = vmatmul.mubr.msk.f32.gmra.mxu1 %vm167_vm4, %v147_v29 }
  0xe6   :  { %410 = vmatprep.mubr.msk.f32.mxu1 %vm463_vm1, %v462_v2 }
  0xe9   :  { %411 = vmatmul.mubr.msk.f32.gmra.mxu1 %vm167_vm4, %v148_v30 }
 0x1a1   :  { %v247_v31 = vpop.f32.mrf.mxu1 }
 0x1a2   :  { %v248_v42 = vadd.f32 %v247_v31, %v155_v40 }
 0x1a3   :  { %v406_v32 = vpop.f32.mrf.mxu1 }
 0x1a5   :  { %v252_v34 = vpop.f32.mrf.mxu1 }
 0x1a6   :  { %v253_v38 = vadd.f32 %v252_v34, %v160_v36 }
 0x1a7   :  { %v409_v35 = vpop.f32.mrf.mxu1 }
 0x1a9   :  { %v257_v37 = vpop.f32.mrf.mxu1 }
 0x1aa   :  { %v258_v39 = vadd.f32 %v257_v37, %v165_v33 }
 0x1ab   :  { %v412_v41 = vpop.f32.mrf.mxu1 }
 0x1ac   :  { %434 = vtanh.f32 %v258_v39 }
 0x1ad   :  { %436 = vtanh.f32 %v253_v38 }
 0x1ae   :  { %438 = vtanh.f32 %v248_v42 }
 0x1b9   :  { %v435_v43 = vpop.eup %434 }
 0x1ba   :  { %414 = vmatpush3.msk.msra.mxu0 %vm177_vm3, %v435_v43  ;;  %v437_v44 = vpop.eup %436 }
 0x1bb   :  { %415 = vmatprep.subr.mxu0 %v462_v2  ;;  %v439_v46 = vpop.eup %438 }
 0x1bc   :  { %416 = vmatpush3.msra.mxu0 %v437_v44 }
 0x1bd   :  { %417 = vmatprep.subr.mxu0 %v462_v2 }
 0x1be   :  { %418 = vmatpush3.msra.mxu0 %v439_v46 }
 0x1bf   :  { %420 = vmatmul.mubr.msk.f32.vlgmr.msra.gmra.mxu0 %vm167_vm4, %v264_v45 }
 0x27f   :  { %v343_v48 = vpop.f32.mrf.mxu0 }
 0x280   :  { %v344_v49 = vadd.f32 %v343_v48, %v269_v47 }
 0x281   :  { %v421_v50 = vpop.f32.mrf.mxu0 }
 0x282   :  { %348 = vst.msk [vmem:[#allocation2] sm:$0xff] %vm347_vm5, %v344_v49 }
 0x283   :  { %451 = shalt.err (!%p448_p4)
}
 0x284   :  { %358 = dma.vmem_to_hbm [thread:$0]  %s356_s26, 128, %s591_s7, [#allocation3]  }
 0x285   :  { %460 = dma.done.wait [#allocation3], 128  }
 0x286   :  { %461 = vsyncadd [#allocation3], 4294967168 }
 0x287   :  { %362 = vsyncpa [#allocation3], 1 }

</bundles_post_ra>
